<compile_context>
chip_gen: v5e
topology: v5e:2x2
jax: 0.10.0
libtpu: 0.0.40
codegen_flags: <defaults>
</compile_context>

<pallas_src>
import functools

import jax
import jax.numpy as jnp
from jax.experimental import pallas as pl
from jax.experimental.pallas import tpu as pltpu


def critic_kernel(s_ref, a_ref, w1s_ref, w1a_ref, b1_ref, w2_ref, b2_ref,
                  w3_ref, b3_ref, out_ref, *, epilogue_dtype):
    # Cast the f32 batch stream to bf16 in-kernel (VPU is idle here); this
    # keeps the only per-batch HBM traffic a single f32 read of state/action.
    s = s_ref[...].astype(jnp.bfloat16)
    a = a_ref[...].astype(jnp.bfloat16)

    # fc1: relu(x @ W1 + b1) as two split-K MXU passes (x = state || action),
    # f32 accumulation.
    h1 = jnp.dot(s, w1s_ref[...], preferred_element_type=jnp.float32)
    h1 = h1 + jnp.dot(a, w1a_ref[...], preferred_element_type=jnp.float32)
    h1 = h1.astype(epilogue_dtype) + b1_ref[...].astype(epilogue_dtype)
    h1 = jnp.maximum(h1, 0)

    # fc2: relu(h1 @ W2 + b2); bf16 operands, f32 accumulation on the MXU.
    h2 = jnp.dot(h1.astype(jnp.bfloat16), w2_ref[...],
                 preferred_element_type=jnp.float32)
    h2 = h2.astype(epilogue_dtype) + b2_ref[...].astype(epilogue_dtype)
    h2 = jnp.maximum(h2, 0)

    # fc3: q = h2 @ W3 + b3 as a VPU multiply + lane reduction against the
    # transposed (1, 300) weight row -- no degenerate (300, 1) MXU pass.
    q = jnp.sum(h2.astype(jnp.float32) * w3_ref[...], axis=-1,
                keepdims=True) + b3_ref[...]
    out_ref[...] = q.astype(out_ref.dtype)


def _round_up(x, m):
    return ((x + m - 1) // m) * m


def _epilogue_dtype_for_backend():
    """bf16 element-wise math only on v6e/v7x VPUs; f32 elsewhere (v5e-safe)."""
    try:
        kind = jax.devices()[0].device_kind.lower()
    except Exception:
        return jnp.float32
    if "v6" in kind or "v7" in kind:
        return jnp.bfloat16
    return jnp.float32


def critic_forward(state, action, params):
    """params: dict with W1 (S+A,400), b1 (1,400), W2 (400,300), b2 (1,300),
    W3 (300,1), b3 (1,1).  Returns (B, 1) f32 Q-values."""
    B, S = state.shape
    _, A = action.shape
    H1 = params["W1"].shape[1]
    H2 = params["W2"].shape[1]

    # bf16 weights for the MXU (halves the dominant W2 DMA); biases and the
    # fc3 row stay f32 and are cast to the epilogue dtype inside the kernel.
    w1s = params["W1"][:S].astype(jnp.bfloat16)     # (S, H1)
    w1a = params["W1"][S:].astype(jnp.bfloat16)     # (A, H1)
    w2 = params["W2"].astype(jnp.bfloat16)          # (H1, H2)
    b1 = params["b1"].astype(jnp.float32)
    b2 = params["b2"].astype(jnp.float32)
    w3_row = params["W3"].astype(jnp.float32).T     # (1, H2)
    b3 = params["b3"].astype(jnp.float32)

    # Adaptive batch tile: big tiles to amortize per-grid-step overhead,
    # <= 7 rows of ragged padding, and >= 2 grid steps once B >= 256 so v7x's
    # two TensorCores each take a share of the "parallel" batch axis.
    TB_TARGET = 1024
    nb = max(1, -(-B // TB_TARGET))                 # ceil-div
    if nb == 1 and B >= 256:
        nb = 2
    if nb == 1:
        TB = B                                      # full-extent block: legal
    else:
        TB = _round_up(-(-B // nb), 8)              # sublane multiple
        nb = -(-B // TB)

    kernel = functools.partial(critic_kernel,
                               epilogue_dtype=_epilogue_dtype_for_backend())

    return pl.pallas_call(
        kernel,
        out_shape=jax.ShapeDtypeStruct((B, 1), jnp.float32),
        grid_spec=pltpu.PrefetchScalarGridSpec(
            num_scalar_prefetch=0,
            grid=(nb,),
            in_specs=[
                pl.BlockSpec((TB, S), lambda i: (i, 0)),    # state (batch tile)
                pl.BlockSpec((TB, A), lambda i: (i, 0)),    # action (batch tile)
                pl.BlockSpec((S, H1), lambda i: (0, 0)),    # W1[:S]   (resident)
                pl.BlockSpec((A, H1), lambda i: (0, 0)),    # W1[S:]   (resident)
                pl.BlockSpec((1, H1), lambda i: (0, 0)),    # b1
                pl.BlockSpec((H1, H2), lambda i: (0, 0)),   # W2       (resident)
                pl.BlockSpec((1, H2), lambda i: (0, 0)),    # b2
                pl.BlockSpec((1, H2), lambda i: (0, 0)),    # W3 row
                pl.BlockSpec((1, 1), lambda i: (0, 0)),     # b3
            ],
            out_specs=pl.BlockSpec((TB, 1), lambda i: (i, 0)),
        ),
        compiler_params=pltpu.CompilerParams(
            dimension_semantics=("parallel",)),
    )(state.astype(jnp.float32), action.astype(jnp.float32),
      w1s, w1a, b1, w2, b2, w3_row, b3)


def init_critic_params(key, state_dim, action_dim):
    """Deterministic init matching nn.Linear default (U[-1/sqrt(fan_in), +])."""
    def linear(k, fan_in, fan_out):
        kw, kb = jax.random.split(k)
        bound = 1.0 / jnp.sqrt(fan_in)
        W = jax.random.uniform(kw, (fan_in, fan_out), jnp.float32, -bound, bound)
        b = jax.random.uniform(kb, (1, fan_out), jnp.float32, -bound, bound)
        return W, b

    k1, k2, k3 = jax.random.split(key, 3)
    W1, b1 = linear(k1, state_dim + action_dim, 400)
    W2, b2 = linear(k2, 400, 300)
    W3, b3 = linear(k3, 300, 1)
    return {"W1": W1, "b1": b1, "W2": W2, "b2": b2, "W3": W3, "b3": b3}


def critic_reference_f32(state, action, params):
    x = jnp.concatenate([state, action], axis=1)
    x = jnp.maximum(x @ params["W1"] + params["b1"], 0.0)
    x = jnp.maximum(x @ params["W2"] + params["b2"], 0.0)
    return x @ params["W3"] + params["b3"]


def critic_reference_matched(state, action, params, epilogue_dtype):
    """XLA reference reproducing the kernel's bf16/f32 mixed precision."""
    S = state.shape[1]
    s = state.astype(jnp.bfloat16)
    a = action.astype(jnp.bfloat16)
    w1 = params["W1"].astype(jnp.bfloat16)
    h1 = (jnp.dot(s, w1[:S], preferred_element_type=jnp.float32)
          + jnp.dot(a, w1[S:], preferred_element_type=jnp.float32))
    h1 = jnp.maximum(h1.astype(epilogue_dtype)
                     + params["b1"].astype(epilogue_dtype), 0)
    h2 = jnp.dot(h1.astype(jnp.bfloat16), params["W2"].astype(jnp.bfloat16),
                 preferred_element_type=jnp.float32)
    h2 = jnp.maximum(h2.astype(epilogue_dtype)
                     + params["b2"].astype(epilogue_dtype), 0)
    return (jnp.sum(h2.astype(jnp.float32) * params["W3"].astype(jnp.float32).T,
                    axis=-1, keepdims=True) + params["b3"])


if __name__ == "__main__":
    STATE_DIM, ACTION_DIM = 16, 8
    key = jax.random.PRNGKey(0)
    kp, ks, ka = jax.random.split(key, 3)
    params = init_critic_params(kp, STATE_DIM, ACTION_DIM)
    epi = _epilogue_dtype_for_backend()

    # Primary check: small batch, single grid step.
    B = 8
    state = jax.random.normal(ks, (B, STATE_DIM), jnp.float32)
    action = jax.random.normal(ka, (B, ACTION_DIM), jnp.float32)
    q = critic_forward(state, action, params)
    jax.block_until_ready(q)
    assert q.shape == (B, 1)

    # Tight check against a precision-matched (bf16 storage, f32 accum) reference.
    q_ref = critic_reference_matched(state, action, params, epi)
    assert jnp.allclose(q, q_ref, atol=2e-3, rtol=2e-3), "mismatch vs matched ref"
    # Loose sanity check against the full-f32 PyTorch-equivalent reference.
    q_f32 = critic_reference_f32(state, action, params)
    assert jnp.allclose(q, q_f32, atol=5e-2, rtol=5e-2), "mismatch vs f32 ref"

    # Secondary check: multi-step grid with a ragged final block (no jnp.pad).
    B2 = 300
    ks2, ka2 = jax.random.split(jax.random.PRNGKey(1))
    state2 = jax.random.normal(ks2, (B2, STATE_DIM), jnp.float32)
    action2 = jax.random.normal(ka2, (B2, ACTION_DIM), jnp.float32)
    q2 = critic_forward(state2, action2, params)
    jax.block_until_ready(q2)
    assert q2.shape == (B2, 1)
    q2_ref = critic_reference_matched(state2, action2, params, epi)
    assert jnp.allclose(q2, q2_ref, atol=2e-3, rtol=2e-3), "mismatch (B=300)"

    print("KERNEL_OK")
</pallas_src>

<mosaic_0001>
module attributes {stable_mosaic.version = 11 : i64} {
  func.func @critic_kernel(%arg0: i32, %arg1: memref<8x16xf32, #tpu.memory_space<vmem>>, %arg2: memref<8x8xf32, #tpu.memory_space<vmem>>, %arg3: memref<16x400xbf16, #tpu.memory_space<vmem>>, %arg4: memref<8x400xbf16, #tpu.memory_space<vmem>>, %arg5: memref<1x400xf32, #tpu.memory_space<vmem>>, %arg6: memref<400x300xbf16, #tpu.memory_space<vmem>>, %arg7: memref<1x300xf32, #tpu.memory_space<vmem>>, %arg8: memref<1x300xf32, #tpu.memory_space<vmem>>, %arg9: memref<1x1xf32, #tpu.memory_space<vmem>>, %arg10: memref<8x1xf32, #tpu.memory_space<vmem>>) attributes {dimension_semantics = [#tpu.dimension_semantics<parallel>], iteration_bounds = array<i64: 1>, scalar_prefetch = 0 : i64, scratch_operands = 0 : i64, tpu.core_type = #tpu.core_type<tc>, window_params = [{transform_indices = @transform_0, window_bounds = array<i64: 8, 16>}, {transform_indices = @transform_1, window_bounds = array<i64: 8, 8>}, {pipeline_mode = #tpu.pipeline_mode<synchronous>, transform_indices = @transform_2, window_bounds = array<i64: 16, 400>}, {pipeline_mode = #tpu.pipeline_mode<synchronous>, transform_indices = @transform_3, window_bounds = array<i64: 8, 400>}, {pipeline_mode = #tpu.pipeline_mode<synchronous>, transform_indices = @transform_4, window_bounds = array<i64: 1, 400>}, {pipeline_mode = #tpu.pipeline_mode<synchronous>, transform_indices = @transform_5, window_bounds = array<i64: 400, 300>}, {pipeline_mode = #tpu.pipeline_mode<synchronous>, transform_indices = @transform_6, window_bounds = array<i64: 1, 300>}, {pipeline_mode = #tpu.pipeline_mode<synchronous>, transform_indices = @transform_7, window_bounds = array<i64: 1, 300>}, {pipeline_mode = #tpu.pipeline_mode<synchronous>, transform_indices = @transform_8, window_bounds = array<i64: 1, 1>}, {transform_indices = @transform_9, window_bounds = array<i64: 8, 1>}]} {
    %c0 = arith.constant 0 : index
    %c0_0 = arith.constant 0 : index
    %0 = vector.load %arg1[%c0, %c0_0] : memref<8x16xf32, #tpu.memory_space<vmem>>, vector<8x16xf32>
    %1 = arith.truncf %0 : vector<8x16xf32> to vector<8x16xbf16>
    %c0_1 = arith.constant 0 : index
    %c0_2 = arith.constant 0 : index
    %2 = vector.load %arg2[%c0_1, %c0_2] : memref<8x8xf32, #tpu.memory_space<vmem>>, vector<8x8xf32>
    %3 = arith.truncf %2 : vector<8x8xf32> to vector<8x8xbf16>
    %c0_3 = arith.constant 0 : index
    %c0_4 = arith.constant 0 : index
    %4 = vector.load %arg3[%c0_3, %c0_4] : memref<16x400xbf16, #tpu.memory_space<vmem>>, vector<16x400xbf16>
    %cst = arith.constant dense<0.000000e+00> : vector<8x400xf32>
    %5 = tpu.matmul %1, %4, %cst {dimension_numbers = #tpu.dot_dimension_numbers<[1], [0], [0], [1], [0, 0, 1, 1], [], []>} : vector<8x16xbf16>, vector<16x400xbf16>, vector<8x400xf32> -> vector<8x400xf32>
    %c0_5 = arith.constant 0 : index
    %c0_6 = arith.constant 0 : index
    %6 = vector.load %arg4[%c0_5, %c0_6] : memref<8x400xbf16, #tpu.memory_space<vmem>>, vector<8x400xbf16>
    %cst_7 = arith.constant dense<0.000000e+00> : vector<8x400xf32>
    %7 = tpu.matmul %3, %6, %cst_7 {dimension_numbers = #tpu.dot_dimension_numbers<[1], [0], [0], [1], [0, 0, 1, 1], [], []>} : vector<8x8xbf16>, vector<8x400xbf16>, vector<8x400xf32> -> vector<8x400xf32>
    %8 = arith.addf %5, %7 : vector<8x400xf32>
    %c0_8 = arith.constant 0 : index
    %c0_9 = arith.constant 0 : index
    %9 = vector.load %arg5[%c0_8, %c0_9] : memref<1x400xf32, #tpu.memory_space<vmem>>, vector<1x400xf32>
    %10 = vector.broadcast %9 : vector<1x400xf32> to vector<8x400xf32>
    %11 = arith.addf %8, %10 : vector<8x400xf32>
    %cst_10 = arith.constant 0.000000e+00 : f32
    %12 = vector.broadcast %cst_10 : f32 to vector<8x400xf32>
    %13 = arith.maximumf %11, %12 : vector<8x400xf32>
    %14 = arith.truncf %13 : vector<8x400xf32> to vector<8x400xbf16>
    %c0_11 = arith.constant 0 : index
    %c0_12 = arith.constant 0 : index
    %15 = vector.load %arg6[%c0_11, %c0_12] : memref<400x300xbf16, #tpu.memory_space<vmem>>, vector<400x300xbf16>
    %cst_13 = arith.constant dense<0.000000e+00> : vector<8x300xf32>
    %16 = tpu.matmul %14, %15, %cst_13 {dimension_numbers = #tpu.dot_dimension_numbers<[1], [0], [0], [1], [0, 0, 1, 1], [], []>} : vector<8x400xbf16>, vector<400x300xbf16>, vector<8x300xf32> -> vector<8x300xf32>
    %c0_14 = arith.constant 0 : index
    %c0_15 = arith.constant 0 : index
    %17 = vector.load %arg7[%c0_14, %c0_15] : memref<1x300xf32, #tpu.memory_space<vmem>>, vector<1x300xf32>
    %18 = vector.broadcast %17 : vector<1x300xf32> to vector<8x300xf32>
    %19 = arith.addf %16, %18 : vector<8x300xf32>
    %cst_16 = arith.constant 0.000000e+00 : f32
    %20 = vector.broadcast %cst_16 : f32 to vector<8x300xf32>
    %21 = arith.maximumf %19, %20 : vector<8x300xf32>
    %c0_17 = arith.constant 0 : index
    %c0_18 = arith.constant 0 : index
    %22 = vector.load %arg8[%c0_17, %c0_18] : memref<1x300xf32, #tpu.memory_space<vmem>>, vector<1x300xf32>
    %23 = vector.broadcast %22 : vector<1x300xf32> to vector<8x300xf32>
    %24 = arith.mulf %21, %23 : vector<8x300xf32>
    %cst_19 = arith.constant dense<0.000000e+00> : vector<8xf32>
    %25 = vector.multi_reduction <add>, %24, %cst_19 [1] : vector<8x300xf32> to vector<8xf32>
    %26 = vector.shape_cast %25 : vector<8xf32> to vector<8x1xf32>
    %c0_20 = arith.constant 0 : index
    %c0_21 = arith.constant 0 : index
    %27 = vector.load %arg9[%c0_20, %c0_21] : memref<1x1xf32, #tpu.memory_space<vmem>>, vector<1x1xf32>
    %28 = vector.broadcast %27 : vector<1x1xf32> to vector<8x1xf32>
    %29 = arith.addf %26, %28 : vector<8x1xf32>
    %c0_22 = arith.constant 0 : index
    %c0_23 = arith.constant 0 : index
    %30 = vector.load %arg10[%c0_22, %c0_23] : memref<8x1xf32, #tpu.memory_space<vmem>>, vector<8x1xf32>
    tpu.vector_store %arg10[%c0_22, %c0_23], %29 {strides = array<i32>} : memref<8x1xf32, #tpu.memory_space<vmem>>, vector<8x1xf32>,
    return
  }
  func.func @transform_0(%arg0: i32) -> (i32, i32) {
    %c0_i32 = arith.constant 0 : i32
    %c0_i32_0 = arith.constant 0 : i32
    return %arg0, %c0_i32 : i32, i32
  }
  func.func @transform_1(%arg0: i32) -> (i32, i32) {
    %c0_i32 = arith.constant 0 : i32
    %c0_i32_0 = arith.constant 0 : i32
    return %arg0, %c0_i32 : i32, i32
  }
  func.func @transform_2(%arg0: i32) -> (i32, i32) {
    %c0_i32 = arith.constant 0 : i32
    %c0_i32_0 = arith.constant 0 : i32
    %c0_i32_1 = arith.constant 0 : i32
    return %c0_i32, %c0_i32_0 : i32, i32
  }
  func.func @transform_3(%arg0: i32) -> (i32, i32) {
    %c0_i32 = arith.constant 0 : i32
    %c0_i32_0 = arith.constant 0 : i32
    %c0_i32_1 = arith.constant 0 : i32
    return %c0_i32, %c0_i32_0 : i32, i32
  }
  func.func @transform_4(%arg0: i32) -> (i32, i32) {
    %c0_i32 = arith.constant 0 : i32
    %c0_i32_0 = arith.constant 0 : i32
    %c0_i32_1 = arith.constant 0 : i32
    return %c0_i32, %c0_i32_0 : i32, i32
  }
  func.func @transform_5(%arg0: i32) -> (i32, i32) {
    %c0_i32 = arith.constant 0 : i32
    %c0_i32_0 = arith.constant 0 : i32
    %c0_i32_1 = arith.constant 0 : i32
    return %c0_i32, %c0_i32_0 : i32, i32
  }
  func.func @transform_6(%arg0: i32) -> (i32, i32) {
    %c0_i32 = arith.constant 0 : i32
    %c0_i32_0 = arith.constant 0 : i32
    %c0_i32_1 = arith.constant 0 : i32
    return %c0_i32, %c0_i32_0 : i32, i32
  }
  func.func @transform_7(%arg0: i32) -> (i32, i32) {
    %c0_i32 = arith.constant 0 : i32
    %c0_i32_0 = arith.constant 0 : i32
    %c0_i32_1 = arith.constant 0 : i32
    return %c0_i32, %c0_i32_0 : i32, i32
  }
  func.func @transform_8(%arg0: i32) -> (i32, i32) {
    %c0_i32 = arith.constant 0 : i32
    %c0_i32_0 = arith.constant 0 : i32
    %c0_i32_1 = arith.constant 0 : i32
    return %c0_i32, %c0_i32_0 : i32, i32
  }
  func.func @transform_9(%arg0: i32) -> (i32, i32) {
    %c0_i32 = arith.constant 0 : i32
    %c0_i32_0 = arith.constant 0 : i32
    return %arg0, %c0_i32 : i32, i32
  }
}

</mosaic_0001>

<bundles_post_ra>
// kernel: tpu_custom_call.1
= control target key start
LH: loop header
LB: loop body
LE: loop exit
PB: predicated region body
PF: predicated region fallthrough
CT: control target
= control target key end

     0   :  { %s1704_s0 = inlined_call_operand.hbm [shape: f32[8,16], index: 0, kind: input, shape index: {}]   ;;  %s1705_s1 = inlined_call_operand.hbm [shape: f32[8,8], index: 1, kind: input, shape index: {}]   ;;  %s1706_s2 = inlined_call_operand.hbm [shape: bf16[16,400], index: 2, kind: input, shape index: {}]   ;;  %s1707_s3 = inlined_call_operand.hbm [shape: bf16[8,400], index: 3, kind: input, shape index: {}]   ;;  %s1708_s4 = inlined_call_operand.vmem [shape: f32[1,400], index: 4, kind: input, shape index: {}]   ;;  %s1709_s5 = inlined_call_operand.hbm [shape: bf16[400,300], index: 5, kind: input, shape index: {}]   ;;  %s1710_s6 = inlined_call_operand.vmem [shape: f32[1,300], index: 6, kind: input, shape index: {}]   ;;  %s1711_s7 = inlined_call_operand.hbm [shape: f32[1,300], index: 7, kind: input, shape index: {}]   ;;  %s1712_s8 = inlined_call_operand.<no memory space> [shape: f32[1,1], index: 8, kind: input, shape index: {}]   ;;  %s1713_s9 = inlined_call_operand.vmem [shape: f32[8,1], index: 9, kind: output, shape index: {}]  }
   0x1   :  { %v14_v0 = vstv %s1712_s8 }
   0x2   :  { %15 = vst [vmem:[#allocation2] sm:$0x1] %v14_v0 }
   0x3   :  { %16 = vsyncpa [#allocation4], 0 }
   0x4   :  { %17 = vsyncpa [#allocation6], 0 }
   0x5   :  { %18 = vsyncpa [#allocation9], 0  ;;  %s36_s13 = sshll.u32 %s1705_s1, 4  ;;  %s37_s13 = int_to_ptr.hbm [resolvable:$true] %s36_s13 }
   0x6   :  { %19 = vsyncpa [#allocation12], 0  ;;  %s1579_s14 = smov [#allocation5]   ;;  %s60_s18 = sshll.u32 %s1707_s3, 4  ;;  %s61_s18 = int_to_ptr.hbm [resolvable:$true] %s60_s18 }
   0x7   :  { %s38_s15 = sshll.u32 %s1579_s14, 4  ;;  %s1580_s8 = smov [#allocation8]   ;;  %s39_s15 = int_to_ptr.vmem [resolvable:$true] %s38_s15 }
   0x8   :  { %41 = dma.hbm_to_vmem [thread:$0]  %s37_s13, 128, %s39_s15, [#allocation6]  }
   0x9   :  { %s62_s19 = sshll.u32 %s1580_s8, 4  ;;  %s25_s22 = sshll.u32 %s1704_s0, 4  ;;  %s63_s19 = int_to_ptr.vmem [resolvable:$true] %s62_s19  ;;  %s26_s22 = int_to_ptr.hbm [resolvable:$true] %s25_s22 }
   0xa   :  { %65 = dma.hbm_to_vmem [thread:$0]  %s61_s18, 256, %s63_s19, [#allocation9]  }
   0xb   :  { %s46_s24 = sshll.u32 %s1706_s2, 4  ;;  %s1581_s25 = smov [#allocation3]   ;;  %s47_s24 = int_to_ptr.hbm [resolvable:$true] %s46_s24 }
   0xc   :  { %s27_s26 = sshll.u32 %s1581_s25, 4  ;;  %s1582_s3 = smov [#allocation7]   ;;  %s28_s26 = int_to_ptr.vmem [resolvable:$true] %s27_s26 }
   0xd   :  { %30 = dma.hbm_to_vmem [thread:$0]  %s26_s22, 128, %s28_s26, [#allocation4]  }
   0xe   :  { %s48_s27 = sshll.u32 %s1582_s3, 4  ;;  %s1583_s28 = smov 256   ;;  %s49_s27 = int_to_ptr.vmem [resolvable:$true] %s48_s27 }
   0xf   :  { %s1584_s29 = smov 16   ;;  %s72_s10 = sshll.u32 %s1709_s5, 4  ;;  %s73_s10 = int_to_ptr.hbm [resolvable:$true] %s72_s10 }
  0x10   :  { %54 = dma.hbm_to_vmem [thread:$0]  %s47_s24, 512, %s49_s27, [#allocation6], %s1583_s28, %s1583_s28, %s1584_s29  }
  0x11   :  { %s1585_s11 = smov [#allocation10]   ;;  %s88_s14 = sshll.u32 %s1711_s7, 4  ;;  %s89_s14 = int_to_ptr.hbm [resolvable:$true] %s88_s14 }
  0x12   :  { %s74_s12 = sshll.u32 %s1585_s11, 4  ;;  %s1586_s15 = smov 192   ;;  %s75_s12 = int_to_ptr.vmem [resolvable:$true] %s74_s12 }
  0x13   :  { %s1587_s16 = smov 12   ;;  %s1588_s17 = smov [#allocation11]  }
  0x14   :  { %80 = dma.hbm_to_vmem [thread:$0]  %s73_s10, 9600, %s75_s12, [#allocation9], %s1586_s15, %s1586_s15, %s1587_s16  }
  0x15   :  { %s90_s18 = sshll.u32 %s1588_s17, 4  ;;  %s91_s18 = int_to_ptr.vmem [resolvable:$true] %s90_s18 }
  0x16   :  { %93 = dma.hbm_to_vmem [thread:$0]  %s89_s14, 48, %s91_s18, [#allocation12]  }
  0x17   :  { %1571 = dma.done.wait [#allocation4], 128  }
  0x18   :  { %1572 = vsyncadd [#allocation4], 4294967168 }
  0x19   :  { %1573 = dma.done.wait [#allocation6], 640  }
  0x1a   :  { %1574 = vsyncadd [#allocation6], 4294966656 }
  0x1b   :  { %1575 = dma.done.wait [#allocation9], 9856  }
  0x1c   :  { %1576 = vsyncadd [#allocation9], 4294957440 }
  0x1d   :  { %1577 = dma.done.wait [#allocation12], 48  }
  0x1e   :  { %1578 = vsyncadd [#allocation12], 4294967248  ;;  %v129_v1 = vld [vmem:[#allocation8] sm:$0xff]  ;;  %v130_v2 = vld [vmem:[#allocation8 + $0x8] sm:$0xff]  ;;  %vm145_vm0 = vcmask 1043456   ;;  %vm141_vm1 = vcmask 64512  }
  0x1f   :  { %v123_v3 = vld [vmem:[#allocation5] sm:$0xff]  ;;  %v133_v4 = vunpack.c.l.b16 %v129_v1  ;;  %v134_v5 = vunpack.c.h.b16 %v129_v1  ;;  %v135_v6 = vunpack.c.l.b16 %v130_v2  ;;  %v136_v7 = vunpack.c.h.b16 %v130_v2  ;;  %v1024_v8 = vld [vmem:[#allocation7 + $0x8] sm:$0xf]  ;;  %v1338_v10 = vld [vmem:[#allocation7 + $0xc] sm:$0xf] }
  0x20   :  { %v1340_v9 = vld [vmem:[#allocation7 + $0x14] sm:$0xf0]  ;;  %v1026_v11 = vld [vmem:[#allocation7 + $0x18] sm:$0xf0]  ;;  %v1016_v16 = vld [vmem:[#allocation7] sm:$0xf]  ;;  %v124_v18 = vpack.c.bf16 %v123_v3, %v123_v3 }
  0x21   :  { %v137_v12 = vpack.c.b16 %v133_v4, %v133_v4  ;;  %v138_v13 = vpack.c.b16 %v134_v5, %v134_v5  ;;  %v139_v14 = vpack.c.b16 %v135_v6, %v135_v6  ;;  %v140_v15 = vpack.c.b16 %v136_v7, %v136_v7  ;;  %v1339_v17 = vld [vmem:[#allocation7 + $0xc] sm:$0xf0]  ;;  %v1337_v21 = vld [vmem:[#allocation7 + $0x4] sm:$0xf]  ;;  %v1018_v22 = vld [vmem:[#allocation7 + $0x10] sm:$0xf0] }
  0x22   :  { %v1025_v19 = vor.u32 %v1340_v9, %v1024_v8  ;;  %v1029_v20 = vor.u32 %v1338_v10, %v1026_v11  ;;  %v1120_v23 = vld [vmem:[#allocation10 + $0xa8] sm:$0xf]  ;;  %v1363_v28 = vld [vmem:[#allocation10 + $0xb0] sm:$0xf0]  ;;  %v1017_v29 = vor.u32 %v1339_v17, %v1016_v16  ;;  %v1021_v30 = vor.u32 %v1337_v21, %v1018_v22  ;;  %v1108_v34 = vld [vmem:[#allocation10 + $0x90] sm:$0xf] }
  0x23   :  { %v147_v24 = vsel %vm145_vm0, %v137_v12, 0  ;;  %v150_v25 = vsel %vm145_vm0, %v138_v13, 0  ;;  %v153_v26 = vsel %vm145_vm0, %v139_v14, 0  ;;  %v156_v27 = vsel %vm145_vm0, %v140_v15, 0  ;;  %v1216_v31 = vld [vmem:[#allocation10 + $0x168] sm:$0xf] }
  0x24   :  { %165 = vmatpush.bf16.msra.mxu0 %v147_v24  ;;  %178 = vmatpush.bf16.msra.mxu1 %v150_v25  ;;  %v1387_v32 = vld [vmem:[#allocation10 + $0x170] sm:$0xf0]  ;;  %v1121_v33 = vor.u32 %v1363_v28, %v1120_v23  ;;  %v1360_v36 = vld [vmem:[#allocation10 + $0x98] sm:$0xf0]  ;;  %v1204_v37 = vld [vmem:[#allocation10 + $0x150] sm:$0xf] }
  0x25   :  { %191 = vmatpush.bf16.msra.mxu2 %v153_v26  ;;  %204 = vmatpush.bf16.msra.mxu3 %v156_v27  ;;  %v1217_v35 = vor.u32 %v1387_v32, %v1216_v31  ;;  %v1384_v38 = vld [vmem:[#allocation10 + $0x158] sm:$0xf0]  ;;  %v1109_v39 = vor.u32 %v1360_v36, %v1108_v34  ;;  %v1096_v40 = vld [vmem:[#allocation10 + $0x78] sm:$0xf]  ;;  %v1357_v42 = vld [vmem:[#allocation10 + $0x80] sm:$0xf0] }
  0x26   :  { %v1205_v41 = vor.u32 %v1384_v38, %v1204_v37  ;;  %v1192_v43 = vld [vmem:[#allocation10 + $0x138] sm:$0xf]  ;;  %v1381_v44 = vld [vmem:[#allocation10 + $0x140] sm:$0xf0]  ;;  %v1097_v45 = vor.u32 %v1357_v42, %v1096_v40  ;;  %v1084_v46 = vld [vmem:[#allocation10 + $0x60] sm:$0xf] }
  0x27   :  { %1010 = vmatmul.msk.bf16.vlgmr.msra.gmra.mxu0 %vm141_vm1, %v124_v18  ;;  %1011 = vmatmul.msk.bf16.vlgmr.msra.gmra.mxu1 %vm141_vm1, %v124_v18  ;;  %v1193_v47 = vor.u32 %v1381_v44, %v1192_v43  ;;  %v1354_v48 = vld [vmem:[#allocation10 + $0x68] sm:$0xf0]  ;;  %v1180_v49 = vld [vmem:[#allocation10 + $0x120] sm:$0xf]  ;;  %v1072_v53 = vld [vmem:[#allocation10 + $0x48] sm:$0xf] }
  0x28   :  { %1012 = vmatmul.msk.bf16.vlgmr.msra.gmra.mxu2 %vm141_vm1, %v124_v18  ;;  %1013 = vmatmul.msk.bf16.vlgmr.msra.gmra.mxu3 %vm141_vm1, %v124_v18  ;;  %v1378_v50 = vld [vmem:[#allocation10 + $0x128] sm:$0xf0]  ;;  %v121_v51 = vld [vmem:[#allocation3] sm:$0xff]  ;;  %v1085_v52 = vor.u32 %v1354_v48, %v1084_v46  ;;  %v1351_v56 = vld [vmem:[#allocation10 + $0x50] sm:$0xf0]  ;;  %vm230_vm2 = vcmask 130048  }
  0x29   :  { %267 = vmatpush.bf16.msrb.mxu2 %v1025_v19  ;;  %280 = vmatpush.bf16.msrb.mxu3 %v1029_v20  ;;  %v1181_v54 = vor.u32 %v1378_v50, %v1180_v49  ;;  %v122_v55 = vpack.c.bf16 %v121_v51, %v121_v51  ;;  %v1168_v57 = vld [vmem:[#allocation10 + $0x108] sm:$0xf]  ;;  %v1375_v58 = vld [vmem:[#allocation10 + $0x110] sm:$0xf0]  ;;  %v1073_v59 = vor.u32 %v1351_v56, %v1072_v53  ;;  %v1060_v61 = vld [vmem:[#allocation10 + $0x30] sm:$0xf] }
  0x2a   :  { %241 = vmatpush.bf16.msrb.mxu0 %v1017_v29  ;;  %254 = vmatpush.bf16.msrb.mxu1 %v1021_v30  ;;  %v1169_v60 = vor.u32 %v1375_v58, %v1168_v57  ;;  %v1348_v62 = vld [vmem:[#allocation10 + $0x38] sm:$0xf0]  ;;  %v1048_v0 = vld [vmem:[#allocation10 + $0x18] sm:$0xf]  ;;  %v1345_v1 = vld [vmem:[#allocation10 + $0x20] sm:$0xf0] }
  0x2b   :  { %v1061_v63 = vor.u32 %v1348_v62, %v1060_v61  ;;  %v1049_v2 = vor.u32 %v1345_v1, %v1048_v0  ;;  %v1036_v3 = vld [vmem:[#allocation10] sm:$0xf]  ;;  %v1342_v4 = vld [vmem:[#allocation10 + $0x8] sm:$0xf0]  ;;  %v1218_v6 = vld [vmem:[#allocation10 + $0x174] sm:$0xf0] }
  0x2c   :  { %v1386_v5 = vld [vmem:[#allocation10 + $0x16c] sm:$0xf]  ;;  %v1037_v7 = vor.u32 %v1342_v4, %v1036_v3  ;;  %v1312_v9 = vld [vmem:[#allocation10 + $0x228] sm:$0xf]  ;;  %v1411_v10 = vld [vmem:[#allocation10 + $0x230] sm:$0xf0] }
  0x2d   :  { %v1221_v8 = vor.u32 %v1386_v5, %v1218_v6  ;;  %v1313_v11 = vor.u32 %v1411_v10, %v1312_v9  ;;  %v1156_v12 = vld [vmem:[#allocation10 + $0xf0] sm:$0xf]  ;;  %v1372_v13 = vld [vmem:[#allocation10 + $0xf8] sm:$0xf0]  ;;  %v1383_v14 = vld [vmem:[#allocation10 + $0x154] sm:$0xf] }
  0x2e   :  { %819 = vmatpush.bf16.msra.mxu0 %v1121_v33  ;;  %832 = vmatpush.bf16.msra.mxu1 %v1217_v35  ;;  %v1157_v15 = vor.u32 %v1372_v13, %v1156_v12  ;;  %v1206_v16 = vld [vmem:[#allocation10 + $0x15c] sm:$0xf0]  ;;  %v1414_v18 = vld [vmem:[#allocation10 + $0x248] sm:$0xf0]  ;;  %v1122_v22 = vld [vmem:[#allocation10 + $0xb4] sm:$0xf0] }
  0x2f   :  { %v1324_v17 = vld [vmem:[#allocation10 + $0x240] sm:$0xf]  ;;  %845 = vmatpush.bf16.msra.mxu2 %v1313_v11  ;;  %v1209_v19 = vor.u32 %v1383_v14, %v1206_v16  ;;  %v1362_v21 = vld [vmem:[#allocation10 + $0xac] sm:$0xf]  ;;  %v1300_v23 = vld [vmem:[#allocation10 + $0x210] sm:$0xf] }
  0x30   :  { %v1325_v20 = vor.u32 %v1414_v18, %v1324_v17  ;;  %v1125_v24 = vor.u32 %v1362_v21, %v1122_v22  ;;  %v1408_v25 = vld [vmem:[#allocation10 + $0x218] sm:$0xf0]  ;;  %v1144_v26 = vld [vmem:[#allocation10 + $0xd8] sm:$0xf]  ;;  %v1369_v27 = vld [vmem:[#allocation10 + $0xe0] sm:$0xf0] }
  0x31   :  { %v1301_v28 = vor.u32 %v1408_v25, %v1300_v23  ;;  %v1145_v29 = vor.u32 %v1369_v27, %v1144_v26  ;;  %v1380_v30 = vld [vmem:[#allocation10 + $0x13c] sm:$0xf]  ;;  %v1194_v31 = vld [vmem:[#allocation10 + $0x144] sm:$0xf0]  ;;  %v1359_v33 = vld [vmem:[#allocation10 + $0x94] sm:$0xf] }
  0x32   :  { %820 = vmatpush.bf16.msra.mxu0 %v1109_v39  ;;  %833 = vmatpush.bf16.msra.mxu1 %v1205_v41  ;;  %v1197_v32 = vor.u32 %v1380_v30, %v1194_v31  ;;  %v1110_v34 = vld [vmem:[#allocation10 + $0x9c] sm:$0xf0]  ;;  %v1288_v36 = vld [vmem:[#allocation10 + $0x1f8] sm:$0xf]  ;;  %v1405_v37 = vld [vmem:[#allocation10 + $0x200] sm:$0xf0] }
  0x33   :  { %865 = vmatpush.bf16.msra.mxu3 %v1325_v20  ;;  %846 = vmatpush.bf16.msra.mxu2 %v1301_v28  ;;  %v1113_v35 = vor.u32 %v1359_v33, %v1110_v34  ;;  %v1289_v38 = vor.u32 %v1405_v37, %v1288_v36  ;;  %v1132_v39 = vld [vmem:[#allocation10 + $0xc0] sm:$0xf]  ;;  %v1366_v40 = vld [vmem:[#allocation10 + $0xc8] sm:$0xf0]  ;;  %v1377_v41 = vld [vmem:[#allocation10 + $0x124] sm:$0xf] }
  0x34   :  { %v1133_v42 = vor.u32 %v1366_v40, %v1132_v39  ;;  %v1182_v43 = vld [vmem:[#allocation10 + $0x12c] sm:$0xf0]  ;;  %v1410_v44 = vld [vmem:[#allocation10 + $0x22c] sm:$0xf]  ;;  %v1356_v48 = vld [vmem:[#allocation10 + $0x7c] sm:$0xf] }
  0x35   :  { %v1185_v46 = vor.u32 %v1377_v41, %v1182_v43  ;;  %v1098_v49 = vld [vmem:[#allocation10 + $0x84] sm:$0xf0]  ;;  %v1276_v50 = vld [vmem:[#allocation10 + $0x1e0] sm:$0xf]  ;;  %v1374_v53 = vld [vmem:[#allocation10 + $0x10c] sm:$0xf] }
  0x36   :  { %821 = vmatpush.bf16.msra.mxu0 %v1097_v45  ;;  %834 = vmatpush.bf16.msra.mxu1 %v1193_v47  ;;  %v1314_v45 = vld [vmem:[#allocation10 + $0x234] sm:$0xf0]  ;;  %v1101_v51 = vor.u32 %v1356_v48, %v1098_v49  ;;  %v1407_v57 = vld [vmem:[#allocation10 + $0x214] sm:$0xf]  ;;  %v1302_v58 = vld [vmem:[#allocation10 + $0x21c] sm:$0xf0] }
  0x37   :  { %1030 = vmatmul.msk.bf16.vlgmr.msrb.gmra.mxu0 %vm230_vm2, %v122_v55  ;;  %1031 = vmatmul.msk.bf16.vlgmr.msrb.gmra.mxu1 %vm230_vm2, %v122_v55  ;;  %v1317_v47 = vor.u32 %v1410_v44, %v1314_v45  ;;  %v1086_v61 = vld [vmem:[#allocation10 + $0x6c] sm:$0xf0]  ;;  %v1399_v0 = vld [vmem:[#allocation10 + $0x1d0] sm:$0xf0]  ;;  %v1158_v3 = vld [vmem:[#allocation10 + $0xfc] sm:$0xf0] }
  0x38   :  { %1032 = vmatmul.msk.bf16.vlgmr.msrb.gmra.mxu2 %vm230_vm2, %v122_v55  ;;  %1033 = vmatmul.msk.bf16.vlgmr.msrb.gmra.mxu3 %vm230_vm2, %v122_v55  ;;  %v1404_v5 = vld [vmem:[#allocation10 + $0x1fc] sm:$0xf]  ;;  %v1290_v6 = vld [vmem:[#allocation10 + $0x204] sm:$0xf0]  ;;  %v1074_v9 = vld [vmem:[#allocation10 + $0x54] sm:$0xf0] }
  0x39   :  { %871 = vmatpush.bf16.msrb.mxu3 %v1125_v24  ;;  %847 = vmatpush.bf16.msra.mxu2 %v1289_v38  ;;  %v1252_v11 = vld [vmem:[#allocation10 + $0x1b0] sm:$0xf]  ;;  %v1396_v12 = vld [vmem:[#allocation10 + $0x1b8] sm:$0xf0]  ;;  %v1401_v17 = vld [vmem:[#allocation10 + $0x1e4] sm:$0xf] }
  0x3a   :  { %822 = vmatpush.bf16.msra.mxu0 %v1085_v52  ;;  %835 = vmatpush.bf16.msra.mxu1 %v1181_v54  ;;  %v1402_v52 = vld [vmem:[#allocation10 + $0x1e8] sm:$0xf0]  ;;  %v1170_v54 = vld [vmem:[#allocation10 + $0x114] sm:$0xf0]  ;;  %v1253_v13 = vor.u32 %v1396_v12, %v1252_v11  ;;  %v1368_v14 = vld [vmem:[#allocation10 + $0xdc] sm:$0xf] }
  0x3b   :  { %v1277_v55 = vor.u32 %v1402_v52, %v1276_v50  ;;  %v1173_v56 = vor.u32 %v1374_v53, %v1170_v54  ;;  %v1278_v18 = vld [vmem:[#allocation10 + $0x1ec] sm:$0xf0]  ;;  %v1347_v20 = vld [vmem:[#allocation10 + $0x34] sm:$0xf]  ;;  %v1062_v21 = vld [vmem:[#allocation10 + $0x3c] sm:$0xf0] }
  0x3c   :  { %v1065_v22 = vor.u32 %v1347_v20, %v1062_v21  ;;  %v1240_v23 = vld [vmem:[#allocation10 + $0x198] sm:$0xf]  ;;  %v1393_v24 = vld [vmem:[#allocation10 + $0x1a0] sm:$0xf0]  ;;  %v1134_v27 = vld [vmem:[#allocation10 + $0xcc] sm:$0xf0] }
  0x3d   :  { %872 = vmatpush.bf16.msrb.mxu3 %v1113_v35  ;;  %848 = vmatpush.bf16.msra.mxu2 %v1277_v55  ;;  %v1241_v25 = vor.u32 %v1393_v24, %v1240_v23  ;;  %v1365_v26 = vld [vmem:[#allocation10 + $0xc4] sm:$0xf]  ;;  %v1266_v30 = vld [vmem:[#allocation10 + $0x1d4] sm:$0xf0]  ;;  %v1050_v33 = vld [vmem:[#allocation10 + $0x24] sm:$0xf0] }
  0x3e   :  { %823 = vmatpush.bf16.msra.mxu0 %v1073_v59  ;;  %836 = vmatpush.bf16.msra.mxu1 %v1169_v60  ;;  %v1305_v59 = vor.u32 %v1407_v57, %v1302_v58  ;;  %v1353_v60 = vld [vmem:[#allocation10 + $0x64] sm:$0xf]  ;;  %v1137_v28 = vor.u32 %v1365_v26, %v1134_v27  ;;  %v1228_v34 = vld [vmem:[#allocation10 + $0x180] sm:$0xf]  ;;  %v1390_v35 = vld [vmem:[#allocation10 + $0x188] sm:$0xf0] }
  0x3f   :  { %v1089_v62 = vor.u32 %v1353_v60, %v1086_v61  ;;  %v1229_v37 = vor.u32 %v1390_v35, %v1228_v34  ;;  %v1395_v38 = vld [vmem:[#allocation10 + $0x1b4] sm:$0xf]  ;;  %v1254_v39 = vld [vmem:[#allocation10 + $0x1bc] sm:$0xf0]  ;;  %v1341_v41 = vld [vmem:[#allocation10 + $0x4] sm:$0xf] }
  0x40   :  { %v1257_v40 = vor.u32 %v1395_v38, %v1254_v39  ;;  %v1413_v44 = vld [vmem:[#allocation10 + $0x244] sm:$0xf]  ;;  %v1326_v45 = vld [vmem:[#allocation10 + $0x24c] sm:$0xf0]  ;;  %v1392_v49 = vld [vmem:[#allocation10 + $0x19c] sm:$0xf] }
  0x41   :  { %873 = vmatpush.bf16.msrb.mxu3 %v1101_v51  ;;  %v1242_v50 = vld [vmem:[#allocation10 + $0x1a4] sm:$0xf0]  ;;  %v1389_v52 = vld [vmem:[#allocation10 + $0x184] sm:$0xf]  ;;  %v1230_v53 = vld [vmem:[#allocation10 + $0x18c] sm:$0xf0] }
  0x42   :  { %824 = vmatpush.bf16.msra.mxu0 %v1061_v63  ;;  %837 = vmatpush.bf16.msra.mxu1 %v1157_v15  ;;  %v1264_v63 = vld [vmem:[#allocation10 + $0x1c8] sm:$0xf]  ;;  %v1245_v51 = vor.u32 %v1392_v49, %v1242_v50  ;;  %v1233_v54 = vor.u32 %v1389_v52, %v1230_v53  ;;  %v1415_v11 = vld [vmem:[#allocation10 + $0x250] sm:$0xf0]  ;;  %v1308_v20 = vld [vmem:[#allocation10 + $0x218] sm:$0xf] }
  0x43   :  { %v1265_v1 = vor.u32 %v1399_v0, %v1264_v63  ;;  %v1146_v15 = vld [vmem:[#allocation10 + $0xe4] sm:$0xf0]  ;;  %v1409_v21 = vld [vmem:[#allocation10 + $0x220] sm:$0xf0]  ;;  %v1128_v26 = vld [vmem:[#allocation10 + $0xb0] sm:$0xf] }
  0x44   :  { %v1149_v16 = vor.u32 %v1368_v14, %v1146_v15  ;;  %v1406_v34 = vld [vmem:[#allocation10 + $0x208] sm:$0xf0]  ;;  %v1116_v39 = vld [vmem:[#allocation10 + $0x98] sm:$0xf]  ;;  %v1403_v49 = vld [vmem:[#allocation10 + $0x1f0] sm:$0xf0] }
  0x45   :  { %874 = vmatpush.bf16.msrb.mxu3 %v1089_v62  ;;  %849 = vmatpush.bf16.msra.mxu2 %v1265_v1  ;;  %v1104_v52 = vld [vmem:[#allocation10 + $0x80] sm:$0xf]  ;;  %vm990_vm3 = vcmask 359424   ;;  %vm1000_vm4 = vcmask 7168  }
  0x46   :  { %825 = vmatpush.bf16.msra.mxu0 %v1049_v2  ;;  %838 = vmatpush.bf16.msra.mxu1 %v1145_v29  ;;  %v1371_v2 = vld [vmem:[#allocation10 + $0xf4] sm:$0xf]  ;;  %v1398_v29 = vld [vmem:[#allocation10 + $0x1cc] sm:$0xf] }
  0x47   :  { %v1161_v4 = vor.u32 %v1371_v2, %v1158_v3  ;;  %v1269_v31 = vor.u32 %v1398_v29, %v1266_v30  ;;  %v1309_v29 = vor.u32 %v1409_v21, %v1308_v20  ;;  %v1364_v30 = vld [vmem:[#allocation10 + $0xb8] sm:$0xf0]  ;;  %v1373_v20 = vld [vmem:[#allocation10 + $0x100] sm:$0xf0] }
  0x49   :  { %850 = vmatpush.bf16.msra.mxu2 %v1253_v13 }
  0x4a   :  { %826 = vmatpush.bf16.msra.mxu0 %v1037_v7  ;;  %839 = vmatpush.bf16.msra.mxu1 %v1133_v42  ;;  %v1293_v7 = vor.u32 %v1404_v5, %v1290_v6  ;;  %v1038_v42 = vld [vmem:[#allocation10 + $0xc] sm:$0xf0] }
  0x4b   :  { %v1041_v43 = vor.u32 %v1341_v41, %v1038_v42  ;;  %v1320_v6 = vld [vmem:[#allocation10 + $0x230] sm:$0xf] }
  0x4d   :  { %851 = vmatpush.bf16.msra.mxu2 %v1241_v25 }
  0x4e   :  { %884 = vmatpush.bf16.msrb.mxu0 %v1221_v8  ;;  %897 = vmatpush.bf16.msrb.mxu1 %v1317_v47  ;;  %v1350_v8 = vld [vmem:[#allocation10 + $0x4c] sm:$0xf] }
  0x4f   :  { %v1077_v10 = vor.u32 %v1350_v8, %v1074_v9  ;;  %v1332_v8 = vld [vmem:[#allocation10 + $0x248] sm:$0xf] }
  0x50   :  { %v1333_v15 = vor.u32 %v1415_v11, %v1332_v8  ;;  %v1176_v8 = vld [vmem:[#allocation10 + $0x110] sm:$0xf]  ;;  %v1248_v11 = vld [vmem:[#allocation10 + $0x1a0] sm:$0xf] }
  0x51   :  { %875 = vmatpush.bf16.msrb.mxu3 %v1077_v10  ;;  %852 = vmatpush.bf16.msra.mxu2 %v1229_v37  ;;  %v1129_v37 = vor.u32 %v1364_v30, %v1128_v26  ;;  %v1056_v26 = vld [vmem:[#allocation10 + $0x20] sm:$0xf] }
  0x52   :  { %885 = vmatpush.bf16.msrb.mxu0 %v1209_v19  ;;  %898 = vmatpush.bf16.msrb.mxu1 %v1305_v59  ;;  %v1281_v19 = vor.u32 %v1401_v17, %v1278_v18  ;;  %v286_v59 = vld [vmem:[%s1708_s4] sm:$0xf] }
  0x53   :  { %v288_v62 = vperm.slane %v286_v59, 0  ;;  %v289_v63 = vperm.slane %v286_v59, 1  ;;  %v290_v12 = vperm.slane %v286_v59, 2  ;;  %v291_v13 = vperm.slane %v286_v59, 3 }
  0x55   :  { %876 = vmatpush.bf16.msrb.mxu3 %v1065_v22 }
  0x56   :  { %886 = vmatpush.bf16.msrb.mxu0 %v1197_v32  ;;  %899 = vmatpush.bf16.msrb.mxu1 %v1293_v7  ;;  %v1344_v32 = vld [vmem:[#allocation10 + $0x1c] sm:$0xf] }
  0x57   :  { %v1053_v36 = vor.u32 %v1344_v32, %v1050_v33  ;;  %v1412_v7 = vld [vmem:[#allocation10 + $0x238] sm:$0xf0]  ;;  %v1296_v33 = vld [vmem:[#allocation10 + $0x200] sm:$0xf] }
  0x58   :  { %v1321_v14 = vor.u32 %v1412_v7, %v1320_v6  ;;  %v1388_v32 = vld [vmem:[#allocation10 + $0x178] sm:$0xf0]  ;;  %v1297_v42 = vor.u32 %v1406_v34, %v1296_v33  ;;  %v1080_v6 = vld [vmem:[#allocation10 + $0x50] sm:$0xf]  ;;  %v1044_v33 = vld [vmem:[#allocation10 + $0x8] sm:$0xf] }
  0x59   :  { %877 = vmatpush.bf16.msrb.mxu3 %v1053_v36  ;;  %v1352_v7 = vld [vmem:[#allocation10 + $0x58] sm:$0xf0]  ;;  %v1343_v34 = vld [vmem:[#allocation10 + $0x10] sm:$0xf0] }
  0x5a   :  { %887 = vmatpush.bf16.msrb.mxu0 %v1185_v46  ;;  %900 = vmatpush.bf16.msrb.mxu1 %v1281_v19  ;;  %v1329_v46 = vor.u32 %v1413_v44, %v1326_v45  ;;  %v1212_v44 = vld [vmem:[#allocation10 + $0x158] sm:$0xf]  ;;  %v1385_v45 = vld [vmem:[#allocation10 + $0x160] sm:$0xf0] }
  0x5c   :  { %917 = vmatpush.bf16.msrb.mxu2 %v1329_v46 }
  0x5d   :  { %878 = vmatpush.bf16.msrb.mxu3 %v1041_v43  ;;  %v1361_v43 = vld [vmem:[#allocation10 + $0xa0] sm:$0xf0] }
  0x5e   :  { %888 = vmatpush.bf16.msrb.mxu0 %v1173_v56  ;;  %901 = vmatpush.bf16.msrb.mxu1 %v1269_v31  ;;  %v1224_v31 = vld [vmem:[#allocation10 + $0x170] sm:$0xf]  ;;  %v1117_v50 = vor.u32 %v1361_v43, %v1116_v39 }
  0x5f   :  { %v1225_v38 = vor.u32 %v1388_v32, %v1224_v31 }
  0x62   :  { %889 = vmatpush.bf16.msrb.mxu0 %v1161_v4  ;;  %902 = vmatpush.bf16.msrb.mxu1 %v1257_v40 }
  0x66   :  { %890 = vmatpush.bf16.msrb.mxu0 %v1149_v16  ;;  %903 = vmatpush.bf16.msrb.mxu1 %v1245_v51  ;;  %v1213_v51 = vor.u32 %v1385_v45, %v1212_v44 }
  0x6a   :  { %891 = vmatpush.bf16.msrb.mxu0 %v1137_v28  ;;  %904 = vmatpush.bf16.msrb.mxu1 %v1233_v54  ;;  %v1358_v54 = vld [vmem:[#allocation10 + $0x88] sm:$0xf0] }
  0x6b   :  { %v1105_v59 = vor.u32 %v1358_v54, %v1104_v52 }
  0xa4   :  { %v167_v47 = vpop.f32.mrf.mxu0  ;;  %v180_v48 = vpop.f32.mrf.mxu1 }
  0xab   :  { %v193_v55 = vpop.f32.mrf.mxu2  ;;  %v206_v56 = vpop.f32.mrf.mxu3 }
  0xac   :  { %v169_v57 = vpop.f32.mrf.mxu0  ;;  %v182_v58 = vpop.f32.mrf.mxu1 }
  0xad   :  { %v1272_v57 = vld [vmem:[#allocation10 + $0x1d0] sm:$0xf]  ;;  %v1400_v58 = vld [vmem:[#allocation10 + $0x1d8] sm:$0xf0] }
  0xb3   :  { %v195_v60 = vpop.f32.mrf.mxu2  ;;  %v208_v61 = vpop.f32.mrf.mxu3 }
  0xb4   :  { %v243_v0 = vpop.f32.mrf.mxu0  ;;  %v256_v1 = vpop.f32.mrf.mxu1  ;;  %v1092_v61 = vld [vmem:[#allocation10 + $0x68] sm:$0xf] }
  0xb5   :  { %v244_v2 = vadd.f32 %v243_v0, %v167_v47  ;;  %v257_v3 = vadd.f32 %v256_v1, %v180_v48  ;;  %v1284_v48 = vld [vmem:[#allocation10 + $0x1e8] sm:$0xf]  ;;  %v1379_v0 = vld [vmem:[#allocation10 + $0x130] sm:$0xf0]  ;;  %v1273_v1 = vor.u32 %v1400_v58, %v1272_v57 }
  0xb6   :  { %v1285_v53 = vor.u32 %v1403_v49, %v1284_v48 }
  0xb7   :  { %v296_v4 = vadd.f32 %v288_v62, %v244_v2  ;;  %v297_v5 = vadd.f32 %v289_v63, %v257_v3  ;;  %v1355_v62 = vld [vmem:[#allocation10 + $0x70] sm:$0xf0]  ;;  %v1188_v63 = vld [vmem:[#allocation10 + $0x128] sm:$0xf]  ;;  %v1260_v2 = vld [vmem:[#allocation10 + $0x1b8] sm:$0xf] }
  0xb8   :  { %v1397_v3 = vld [vmem:[#allocation10 + $0x1c0] sm:$0xf0] }
  0xb9   :  { %v300_v9 = vmax.f32 %v296_v4, 0.0  ;;  %v301_v10 = vmax.f32 %v297_v5, 0.0  ;;  %v1093_v4 = vor.u32 %v1355_v62, %v1092_v61  ;;  %v1189_v5 = vor.u32 %v1379_v0, %v1188_v63 }
  0xbb   :  { %v1675_v16 = vpack.c.bf16 %v300_v9, %v300_v9  ;;  %v1677_v17 = vpack.c.bf16 %v301_v10, %v301_v10  ;;  %v269_v18 = vpop.f32.mrf.mxu2  ;;  %v282_v19 = vpop.f32.mrf.mxu3  ;;  %v1376_v9 = vld [vmem:[#allocation10 + $0x118] sm:$0xf0]  ;;  %v1261_v10 = vor.u32 %v1397_v3, %v1260_v2 }
  0xbc   :  { %v270_v22 = vadd.f32 %v269_v18, %v193_v55  ;;  %v283_v23 = vadd.f32 %v282_v19, %v206_v56  ;;  %v245_v24 = vpop.f32.mrf.mxu0  ;;  %v258_v25 = vpop.f32.mrf.mxu1  ;;  %v1200_v55 = vld [vmem:[#allocation10 + $0x140] sm:$0xf]  ;;  %v1382_v56 = vld [vmem:[#allocation10 + $0x148] sm:$0xf0]  ;;  %v1349_v18 = vld [vmem:[#allocation10 + $0x40] sm:$0xf0] }
  0xbd   :  { %827 = vmatmul.bf16.vlgmr.msra.gmra.mxu0 %v1675_v16  ;;  %840 = vmatmul.bf16.vlgmr.msra.gmra.mxu1 %v1677_v17  ;;  %v1201_v60 = vor.u32 %v1382_v56, %v1200_v55  ;;  %v1164_v19 = vld [vmem:[#allocation10 + $0xf8] sm:$0xf] }
  0xbe   :  { %v298_v27 = vadd.f32 %v290_v12, %v270_v22  ;;  %v299_v28 = vadd.f32 %v291_v13, %v283_v23  ;;  %949 = vmatpush.bf16.msra.mxu0 %v1321_v14  ;;  %969 = vmatpush.bf16.msra.mxu1 %v1333_v15  ;;  %v1394_v12 = vld [vmem:[#allocation10 + $0x1a8] sm:$0xf0]  ;;  %v1081_v13 = vor.u32 %v1352_v7, %v1080_v6  ;;  %v1068_v15 = vld [vmem:[#allocation10 + $0x38] sm:$0xf]  ;;  %v1236_v22 = vld [vmem:[#allocation10 + $0x188] sm:$0xf] }
  0xbf   :  { %v1177_v14 = vor.u32 %v1376_v9, %v1176_v8  ;;  %v1249_v21 = vor.u32 %v1394_v12, %v1248_v11  ;;  %v1391_v23 = vld [vmem:[#allocation10 + $0x190] sm:$0xf0]  ;;  %v1069_v24 = vor.u32 %v1349_v18, %v1068_v15  ;;  %v1165_v25 = vor.u32 %v1373_v20, %v1164_v19  ;;  %v978_v8 = vld [vmem:[#allocation11] sm:$0x7] }
  0xc0   :  { %v302_v35 = vmax.f32 %v298_v27, 0.0  ;;  %v303_v36 = vmax.f32 %v299_v28, 0.0  ;;  %v1346_v27 = vld [vmem:[#allocation10 + $0x28] sm:$0xf0]  ;;  %v1152_v28 = vld [vmem:[#allocation10 + $0xe0] sm:$0xf]  ;;  %v1237_v30 = vor.u32 %v1391_v23, %v1236_v22 }
  0xc1   :  { %v1057_v31 = vor.u32 %v1346_v27, %v1056_v26  ;;  %v981_v11 = vperm.slane %v978_v8, 1  ;;  %v982_v18 = vperm.slane %v978_v8, 2 }
  0xc2   :  { %v1681_v40 = vpack.c.bf16 %v302_v35, %v302_v35  ;;  %v1683_v41 = vpack.c.bf16 %v303_v36, %v303_v36  ;;  %950 = vmatpush.bf16.msra.mxu0 %v1309_v29  ;;  %v1370_v29 = vld [vmem:[#allocation10 + $0xe8] sm:$0xf0]  ;;  %v1140_v35 = vld [vmem:[#allocation10 + $0xc8] sm:$0xf]  ;;  %v1367_v36 = vld [vmem:[#allocation10 + $0xd0] sm:$0xf0] }
  0xc3   :  { %v271_v46 = vpop.f32.mrf.mxu2  ;;  %v284_v47 = vpop.f32.mrf.mxu3  ;;  %v1153_v32 = vor.u32 %v1370_v29, %v1152_v28  ;;  %v1426_v28 = vld [vmem:[#allocation2] ss:$0 sm:$0xff] }
  0xc4   :  { %853 = vmatmul.bf16.vlgmr.msra.gmra.mxu2 %v1681_v40  ;;  %1334 = vmatmul.msk.bf16.vlgmr.msra.gmra.mxu3 %vm230_vm2, %v1683_v41 }
  0xc5   :  { %923 = vmatpush.bf16.msra.mxu2 %v1129_v37  ;;  %936 = vmatpush.bf16.msra.mxu3 %v1225_v38  ;;  %v1045_v37 = vor.u32 %v1343_v34, %v1044_v33  ;;  %v1141_v38 = vor.u32 %v1367_v36, %v1140_v35 }
  0xc6   :  { %951 = vmatpush.bf16.msra.mxu0 %v1297_v42 }
  0xc9   :  { %924 = vmatpush.bf16.msra.mxu2 %v1117_v50  ;;  %937 = vmatpush.bf16.msra.mxu3 %v1213_v51 }
  0xca   :  { %952 = vmatpush.bf16.msra.mxu0 %v1285_v53 }
  0xcd   :  { %925 = vmatpush.bf16.msra.mxu2 %v1105_v59  ;;  %938 = vmatpush.bf16.msra.mxu3 %v1201_v60 }
  0xce   :  { %892 = vmatmul.bf16.vlgmr.msrb.gmra.mxu0 %v1677_v17  ;;  %905 = vmatmul.bf16.vlgmr.msrb.gmra.mxu1 %v1681_v40 }
  0xcf   :  { %953 = vmatpush.bf16.msra.mxu0 %v1273_v1 }
  0xd1   :  { %926 = vmatpush.bf16.msra.mxu2 %v1093_v4  ;;  %939 = vmatpush.bf16.msra.mxu3 %v1189_v5 }
  0xd3   :  { %954 = vmatpush.bf16.msra.mxu0 %v1261_v10 }
  0xd4   :  { %879 = vmatmul.bf16.vlgmr.msrb.gmra.mxu3 %v1675_v16  ;;  %1335 = vmatmul.msk.bf16.vlgmr.msrb.gmra.mxu2 %vm230_vm2, %v1683_v41 }
  0xd5   :  { %927 = vmatpush.bf16.msra.mxu2 %v1081_v13  ;;  %940 = vmatpush.bf16.msra.mxu3 %v1177_v14  ;;  %v980_v14 = vperm.slane %v978_v8, 0 }
  0xd7   :  { %955 = vmatpush.bf16.msra.mxu0 %v1249_v21 }
  0xd9   :  { %928 = vmatpush.bf16.msra.mxu2 %v1069_v24  ;;  %941 = vmatpush.bf16.msra.mxu3 %v1165_v25 }
  0xdb   :  { %956 = vmatpush.bf16.msra.mxu0 %v1237_v30 }
  0xdd   :  { %929 = vmatpush.bf16.msra.mxu2 %v1057_v31  ;;  %942 = vmatpush.bf16.msra.mxu3 %v1153_v32 }
  0xde   :  { %957 = vmatmul.bf16.vlgmr.msra.gmra.mxu0 %v1681_v40  ;;  %1336 = vmatmul.msk.bf16.vlgmr.msra.gmra.mxu1 %vm230_vm2, %v1683_v41  ;;  %v408_v41 = vld [vmem:[%s1710_s6] sm:$0x7] }
  0xdf   :  { %v411_v52 = vperm.slane %v408_v41, 1  ;;  %v412_v1 = vperm.slane %v408_v41, 2 }
  0xe1   :  { %930 = vmatpush.bf16.msra.mxu2 %v1045_v37  ;;  %943 = vmatpush.bf16.msra.mxu3 %v1141_v38 }
  0xe4   :  { %931 = vmatmul.bf16.vlgmr.msra.gmra.mxu2 %v1675_v16  ;;  %944 = vmatmul.bf16.vlgmr.msra.gmra.mxu3 %v1677_v17  ;;  %v410_v17 = vperm.slane %v408_v41, 0 }
 0x13a   :  { %v828_v39 = vpop.f32.mrf.mxu0  ;;  %v841_v42 = vpop.f32.mrf.mxu1 }
 0x13b   :  { %v829_v57 = vadd.f32 %v828_v39, %v410_v17 }
 0x13d   :  { %v842_v61 = vadd.f32 %v841_v42, %v829_v57 }
 0x142   :  { %v830_v43 = vpop.f32.mrf.mxu0  ;;  %v843_v44 = vpop.f32.mrf.mxu1 }
 0x147   :  { %v854_v45 = vpop.f32.mrf.mxu2  ;;  %v867_v46 = vpop.f32.mrf.mxu3 }
 0x148   :  { %v855_v2 = vadd.f32 %v854_v45, %v842_v61 }
 0x14a   :  { %v868_v7 = vadd.f32 %v867_v46, %v855_v2 }
 0x14b   :  { %v893_v47 = vpop.f32.mrf.mxu0  ;;  %v906_v48 = vpop.f32.mrf.mxu1 }
 0x14c   :  { %v975_v13 = vmax.f32 %v868_v7, 0.0 }
 0x14e   :  { %v986_v23 = vmul.f32 %v980_v14, %v975_v13 }
 0x14f   :  { %v856_v49 = vpop.f32.mrf.mxu2  ;;  %v869_v50 = vpop.f32.mrf.mxu3 }
 0x153   :  { %v895_v40 = vpop.f32.mrf.mxu0  ;;  %v908_v51 = vpop.f32.mrf.mxu1 }
 0x157   :  { %v880_v16 = vpop.f32.mrf.mxu3  ;;  %v919_v53 = vpop.f32.mrf.mxu2 }
 0x158   :  { %v881_v54 = vadd.f32 %v880_v16, %v411_v52 }
 0x15a   :  { %v894_v58 = vadd.f32 %v893_v47, %v881_v54 }
 0x15b   :  { %v958_v55 = vpop.f32.mrf.mxu0  ;;  %v971_v56 = vpop.f32.mrf.mxu1 }
 0x15c   :  { %v907_v62 = vadd.f32 %v906_v48, %v894_v58 }
 0x15e   :  { %v920_v3 = vadd.f32 %v919_v53, %v907_v62 }
 0x15f   :  { %v882_v59 = vpop.f32.mrf.mxu3  ;;  %v921_v60 = vpop.f32.mrf.mxu2 }
 0x160   :  { %v976_v10 = vmax.f32 %v920_v3, 0.0 }
 0x162   :  { %v987_v19 = vmul.f32 %v981_v11, %v976_v10 }
 0x163   :  { %v960_v63 = vpop.f32.mrf.mxu0  ;;  %v973_v0 = vpop.f32.mrf.mxu1 }
 0x164   :  { %v989_v25 = vadd.f32 %v987_v19, %v986_v23 }
 0x167   :  { %v932_v4 = vpop.f32.mrf.mxu2  ;;  %v945_v5 = vpop.f32.mrf.mxu3 }
 0x168   :  { %v933_v6 = vadd.f32 %v932_v4, %v412_v1 }
 0x16a   :  { %v946_v9 = vadd.f32 %v945_v5, %v933_v6 }
 0x16c   :  { %v959_v12 = vadd.f32 %v958_v55, %v946_v9 }
 0x16e   :  { %v972_v15 = vadd.f32 %v971_v56, %v959_v12 }
 0x16f   :  { %v934_v20 = vpop.f32.mrf.mxu2  ;;  %v947_v21 = vpop.f32.mrf.mxu3 }
 0x170   :  { %v977_v22 = vmax.f32 %v972_v15, 0.0 }
 0x172   :  { %v988_v24 = vmul.f32 %v982_v18, %v977_v22 }
 0x174   :  { %v991_v26 = vsel %vm990_vm3, %v988_v24, 0.0 }
 0x175   :  { %v992_v27 = vadd.f32 %v991_v26, %v989_v25 }
 0x177   :  { %993 = vadd.xlane.f32.xlu0 %v992_v27 }
 0x1ea   :  { %v994_v29 = vpop.xlane.xlu0 %993 }
 0x1eb   :  { %v999_v30 = vadd.f32 %v1426_v28, %v994_v29 }
 0x1ed   :  { %1001 = vst.msk [vmem:[%s1713_s9] sm:$0xff] %vm1000_vm4, %v999_v30 }
 0x1ee   :  { %1006 = vsyncpa [#allocation4], 1 }
 0x1ef   :  { %1007 = vsyncpa [#allocation6], 1 }
 0x1f0   :  { %1008 = vsyncpa [#allocation9], 1 }
 0x1f1   :  { %1009 = vsyncpa [#allocation12], 1 }

</bundles_post_ra>
